<compile_context>
chip_gen: v7x
topology: tpu7x:2x2x1
jax: 0.10.0
libtpu: 0.0.40
codegen_flags: <defaults>
</compile_context>

<pallas_src>
from functools import partial

import jax
import jax.numpy as jnp
from jax.experimental import pallas as pl
from jax.experimental.pallas import tpu as pltpu


def _dma_copy_kernel(rows_per_step, num_splits, x_ref, o_ref, sem):
    """Direct HBM->HBM copy of (a slice of) the parameter. No VMEM staging."""
    if num_splits == 1:
        cp = pltpu.make_async_copy(x_ref, o_ref, sem)
    else:
        i = pl.program_id(0)
        start = pl.multiple_of(i * rows_per_step, rows_per_step)
        cp = pltpu.make_async_copy(
            x_ref.at[pl.ds(start, rows_per_step)],
            o_ref.at[pl.ds(start, rows_per_step)],
            sem,
        )
    cp.start()
    cp.wait()


def _pallas_identity_copy(noise: jax.Array) -> jax.Array:
    shape, dtype = noise.shape, noise.dtype
    nbytes = noise.size * jnp.dtype(dtype).itemsize

    # Split across 2 "parallel" grid steps only when worth it and the leading
    # dim splits evenly; each v7x TensorCore then issues its own DMA.  Slicing
    # is only ever on the majormost dim, so no (8,128) alignment is needed.
    leading = shape[0]
    num_splits = 2 if (leading % 2 == 0 and nbytes >= (1 << 20)) else 1
    rows_per_step = leading // num_splits

    return pl.pallas_call(
        partial(_dma_copy_kernel, rows_per_step, num_splits),
        out_shape=jax.ShapeDtypeStruct(shape, dtype),
        grid=(num_splits,),
        in_specs=[pl.BlockSpec(memory_space=pl.ANY)],
        out_specs=pl.BlockSpec(memory_space=pl.ANY),
        scratch_shapes=[pltpu.SemaphoreType.DMA],
        compiler_params=pltpu.CompilerParams(
            dimension_semantics=("parallel",),
        ),
    )(noise)


@jax.jit
def noise_forward(noise: jax.Array) -> jax.Array:
    """Pallas equivalent of Noise.forward(): returns the parameter tensor."""
    # Size-0 / 0-d tensors: nothing to copy, the identity is the value itself.
    if noise.ndim == 0 or noise.size == 0:
        return noise
    return _pallas_identity_copy(noise)


class NoiseJax:
    """Mirror of the PyTorch module: __init__(*dim) creates randn(*dim)."""

    def __init__(self, *dim, key=None, use_pallas_kernel=False):
        if key is None:
            key = jax.random.PRNGKey(0)
        # Deterministic stand-in for torch.randn(*dim).
        self.noise = jax.random.normal(key, dim, dtype=jnp.float32)
        self.use_pallas_kernel = use_pallas_kernel

    def forward(self):
        if self.use_pallas_kernel:
            return noise_forward(self.noise)
        # Recommended fast path: forward() is a pure identity, so just return
        # the parameter -- zero HBM traffic, zero launch overhead.
        return self.noise


if __name__ == "__main__":
    # 1) Fast path: identity returns the parameter itself (no kernel).
    module = NoiseJax(2, 4, 16, 128, key=jax.random.PRNGKey(0))
    out = jax.block_until_ready(module.forward())
    assert out.shape == module.noise.shape and out.dtype == module.noise.dtype
    assert bool(jnp.array_equal(out, module.noise))

    # 2) Pallas path, small aligned shape: single full-buffer HBM->HBM DMA.
    module_k = NoiseJax(2, 4, 16, 128, key=jax.random.PRNGKey(0),
                        use_pallas_kernel=True)
    out_k = jax.block_until_ready(module_k.forward())
    assert out_k.shape == module_k.noise.shape
    assert out_k.dtype == module_k.noise.dtype
    assert bool(jnp.array_equal(out_k, module_k.noise))

    # 3) Pallas path, unaligned shape (not a multiple of (8, 128)): no padding
    #    or slice-back needed -- the DMA copies the buffer as-is.
    module_odd = NoiseJax(3, 5, 7, key=jax.random.PRNGKey(1),
                          use_pallas_kernel=True)
    out_odd = jax.block_until_ready(module_odd.forward())
    assert out_odd.shape == module_odd.noise.shape
    assert bool(jnp.array_equal(out_odd, module_odd.noise))

    # 4) Pallas path, >= 1 MiB with even leading dim: exercises the 2-way
    #    "parallel" split so both v7x TensorCores issue DMAs.
    module_big = NoiseJax(2, 512, 512, key=jax.random.PRNGKey(2),
                          use_pallas_kernel=True)
    out_big = jax.block_until_ready(module_big.forward())
    assert out_big.shape == module_big.noise.shape
    assert bool(jnp.array_equal(out_big, module_big.noise))

    print("KERNEL_OK")
</pallas_src>

<mosaic_0001>
module attributes {stable_mosaic.version = 11 : i64} {
  func.func @_dma_copy_kernel(%arg0: i32, %arg1: memref<2x4x16x128xf32, #tpu.memory_space<any>>, %arg2: memref<2x4x16x128xf32, #tpu.memory_space<any>>, %arg3: memref<!tpu.dma_semaphore, #tpu.memory_space<semaphore_mem>>) attributes {dimension_semantics = [#tpu.dimension_semantics<parallel>], iteration_bounds = array<i64: 1>, scalar_prefetch = 0 : i64, scratch_operands = 1 : i64, tpu.core_type = #tpu.core_type<tc>, window_params = [{}, {}]} {
    tpu.enqueue_dma source(%arg1 : memref<2x4x16x128xf32, #tpu.memory_space<any>>) target(%arg2 : memref<2x4x16x128xf32, #tpu.memory_space<any>>) target_semaphore(%arg3 : memref<!tpu.dma_semaphore, #tpu.memory_space<semaphore_mem>>)
    tpu.wait_dma2 semaphore(%arg3 : memref<!tpu.dma_semaphore, #tpu.memory_space<semaphore_mem>>) src(%arg1 : memref<2x4x16x128xf32, #tpu.memory_space<any>>) dst(%arg2 : memref<2x4x16x128xf32, #tpu.memory_space<any>>)
    return
  }
}

</mosaic_0001>

<bundles_post_ra>
// kernel: noise_forward.1
= control target key start
LH: loop header
LB: loop body
LE: loop exit
PB: predicated region body
PF: predicated region fallthrough
CT: control target
= control target key end

     0   :  { %s36_s6 = smov [#allocation2]   ;;  %s37_s7 = smov [#allocation3]   ;;  %s55_s0 = inlined_call_operand.hbm [shape: f32[2,4,16,128], index: 0, kind: input, shape index: {}]   ;;  %s56_s1 = inlined_call_operand.hbm [shape: f32[2,4,16,128], index: 1, kind: output, shape index: {}]  }
   0x1   :  { %s38_s8 = smov 0  }
   0x2   :  { %18 = dma.general %s55_s0, 2048, %s56_s1, %s36_s6, %s37_s7, [#allocation4], %s38_s8, 0  }
   0x3   :  { %34 = dma.done.wait [#allocation2], 2048 }
   0x4   :  { %35 = vsyncadd [#allocation2], 4294965248 }
   0x5   :  { %24 = vsyncmov [#allocation2] }
   0x8   :  { %s25_s13 = vpop.sfrf %24 }
   0x9   :  { %p30_p0 = scmp.ne.s32.totalorder %s25_s13, 0 }
   0xb   :  { %29 = shalt.err (%p30_p0)  }

</bundles_post_ra>
